<compile_context>
chip_gen: v5e
topology: v5e:2x2
jax: 0.10.0
libtpu: 0.0.40
codegen_flags: <defaults>
</compile_context>

<pallas_src>
import functools

import jax
import jax.numpy as jnp
from jax.experimental import pallas as pl
from jax.experimental.pallas import tpu as pltpu  # noqa: F401  (TPU backend)

LANES = 128
EPS = 1e-5


def _round_up(n, m):
    return ((n + m - 1) // m) * m


def _olivettiface_kernel(x_ref, w1_ref, params_ref, w2_ref, out_ref, *,
                         inv_batch, hp, op):
    """Fused Linear1 -> BatchNorm1d(train) -> ReLU -> Linear2 in one block.

    params_ref is a packed (3, slab) f32 slab:
      row 0: gamma (padded to hp), row 1: beta (padded to hp),
      row 2: b2 (padded to op).

    NOTE: the Linear1 bias b1 is intentionally absent. In training-mode
    BatchNorm (batch statistics) b1 only shifts the batch mean and is exactly
    cancelled by the mean subtraction, so it has no effect on the output.
    This shortcut is ONLY valid with batch-stat BN; an eval-mode /
    running-stats variant must re-introduce b1.
    """
    mm_dtype = w1_ref.dtype
    x = x_ref[...].astype(mm_dtype)  # in-kernel cast (no-op on the f32 path)

    # ---- Linear 1 (MXU, f32 accumulation; bias dropped, see note) ---------
    h = jnp.dot(x, w1_ref[...], preferred_element_type=jnp.float32)

    # ---- BatchNorm1d, training mode (batch stats, biased variance) --------
    # Two independent axis-0 reductions; var = E[h^2] - mean^2 (clamped at 0).
    # With b1 removed |mean| stays small, limiting cancellation error here.
    s1 = jnp.sum(h, axis=0, keepdims=True)
    s2 = jnp.sum(h * h, axis=0, keepdims=True)
    mean = s1 * inv_batch
    var = jnp.maximum(s2 * inv_batch - mean * mean, 0.0)
    inv_std = jax.lax.rsqrt(var + EPS)                      # EUP slot

    # BN folded into one per-feature scale/shift (computed on (1,Hp) rows);
    # the big (B,Hp) slab sees only a mul + add. All BN math stays f32
    # (v5e's VPU/EUP have no bf16).
    scale = params_ref[0:1, :hp] * inv_std                  # gamma * inv_std
    shift = params_ref[1:2, :hp] - mean * scale             # beta - mean*scale
    bn = h * scale + shift

    # ---- ReLU + Linear 2 (lane-dense, unmasked output store) --------------
    act = jnp.maximum(bn, 0.0).astype(w2_ref.dtype)
    out_ref[...] = (jnp.dot(act, w2_ref[...],
                            preferred_element_type=jnp.float32)
                    + params_ref[2:3, :op])


def prepare_olivettiface_params(w1, b1, gamma, beta, w2, b2,
                                matmul_dtype=jnp.float32):
    """One-time (per weight update) padding / packing of the parameters.

    Hoisted out of the per-call forward so the pad / cast / scatter ops do
    not rerun on every forward. `b1` is accepted for API parity with the
    PyTorch module but deliberately unused: training-mode BN cancels it
    (see kernel docstring).
    """
    del b1  # cancelled by training-mode BatchNorm mean subtraction
    I, H = w1.shape
    O = w2.shape[1]
    Hp = _round_up(H, LANES)
    Op = _round_up(O, LANES)
    slab_w = max(Hp, Op)

    # Lane-dense zero padding of hidden/output feature axes. Padded hidden
    # columns stay exactly 0 through BN/ReLU (scale*0 + (0 - 0*scale) == 0
    # since gamma/beta/mean are 0 there), and padded output columns are
    # sliced off in the forward wrapper.
    w1_p = jnp.pad(w1, ((0, 0), (0, Hp - H))).astype(matmul_dtype)
    w2_p = jnp.pad(w2, ((0, Hp - H), (0, Op - O))).astype(matmul_dtype)

    # All per-feature f32 parameters packed into one slab: a single DMA/tile.
    params = jnp.zeros((3, slab_w), jnp.float32)
    params = params.at[0, :H].set(jnp.reshape(gamma, (-1,)))
    params = params.at[1, :H].set(jnp.reshape(beta, (-1,)))
    params = params.at[2, :O].set(jnp.reshape(b2, (-1,)))

    meta = dict(I=I, H=H, O=O, Hp=Hp, Op=Op, slab_w=slab_w)
    return (w1_p, params, w2_p), meta


def olivettiface_forward(x, packed, meta):
    """Forward logits. x: [B, I] f32; packed/meta from prepare_olivettiface_params."""
    w1_p, params, w2_p = packed
    B, I = x.shape
    Hp, Op, O, slab_w = meta["Hp"], meta["Op"], meta["O"], meta["slab_w"]

    # Advisory cost hint: this kernel is launch/schedule-overhead bound.
    itemsize = jnp.dtype(w1_p.dtype).itemsize
    flops = 2 * B * I * Hp + 2 * B * Hp * Op + 8 * B * Hp
    bytes_accessed = (x.size * x.dtype.itemsize
                      + w1_p.size * itemsize + w2_p.size * itemsize
                      + params.size * 4 + B * Op * 4)
    cost = pl.CostEstimate(flops=flops, transcendentals=Hp,
                           bytes_accessed=bytes_accessed)

    kernel = functools.partial(_olivettiface_kernel,
                               inv_batch=1.0 / B, hp=Hp, op=Op)

    y_full = pl.pallas_call(
        kernel,
        out_shape=jax.ShapeDtypeStruct((B, Op), jnp.float32),
        in_specs=[
            pl.BlockSpec((B, I), lambda: (0, 0)),        # x
            pl.BlockSpec((I, Hp), lambda: (0, 0)),       # w1 (padded, pre-cast)
            pl.BlockSpec((3, slab_w), lambda: (0, 0)),   # packed gamma/beta/b2
            pl.BlockSpec((Hp, Op), lambda: (0, 0)),      # w2 (padded, pre-cast)
        ],
        out_specs=pl.BlockSpec((B, Op), lambda: (0, 0)),
        cost_estimate=cost,
    )(x, w1_p, params, w2_p)

    # TODO(synk): consumers that can accept the padded (B, Op) slab should do
    # so and skip this tiny slice op (it is a separate XLA op at toy sizes).
    return y_full[:, :O]


def reference_forward(x, w1, b1, gamma, beta, w2, b2):
    """Pure-JAX f32 reference matching the PyTorch training-mode forward."""
    h = x @ w1 + b1[None, :]
    mean = jnp.mean(h, axis=0, keepdims=True)
    var = jnp.mean((h - mean) ** 2, axis=0, keepdims=True)
    bn = gamma[None, :] * (h - mean) / jnp.sqrt(var + EPS) + beta[None, :]
    act = jnp.maximum(bn, 0.0)
    return act @ w2 + b2[None, :]


if __name__ == "__main__":
    # Small shapes consistent with the MLP forward:
    #   input_size=64, hidden_size=32, output_size=16, batch=8
    B, I, H, O = 8, 64, 32, 16

    key = jax.random.PRNGKey(0)
    kx, kw1, kb1, kw2, kb2 = jax.random.split(key, 5)

    x = jax.random.normal(kx, (B, I), dtype=jnp.float32)

    # Deterministic PyTorch-style Linear init: U(-1/sqrt(fan_in), 1/sqrt(fan_in))
    bound1 = 1.0 / jnp.sqrt(jnp.float32(I))
    w1 = jax.random.uniform(kw1, (I, H), jnp.float32, -bound1, bound1)
    b1 = jax.random.uniform(kb1, (H,), jnp.float32, -bound1, bound1)

    bound2 = 1.0 / jnp.sqrt(jnp.float32(H))
    w2 = jax.random.uniform(kw2, (H, O), jnp.float32, -bound2, bound2)
    b2 = jax.random.uniform(kb2, (O,), jnp.float32, -bound2, bound2)

    # BatchNorm1d default init: gamma=1, beta=0
    gamma = jnp.ones((H,), jnp.float32)
    beta = jnp.zeros((H,), jnp.float32)

    y_ref = reference_forward(x, w1, b1, gamma, beta, w2, b2)

    # One-time parameter preparation (hoisted out of the per-call path).
    # Default f32 MXU operands at these toy, launch-bound shapes; pass
    # matmul_dtype=jnp.bfloat16 here for the in-kernel-cast fast path once
    # shapes are large enough to be MXU/HBM-bound.
    packed, meta = prepare_olivettiface_params(w1, b1, gamma, beta, w2, b2)

    y = jax.block_until_ready(olivettiface_forward(x, packed, meta))
    assert y.shape == (B, O)
    assert jnp.allclose(y, y_ref, atol=1e-4, rtol=1e-4), "f32 mismatch"

    print("KERNEL_OK")
</pallas_src>

<mosaic_0001>
module attributes {stable_mosaic.version = 11 : i64} {
  func.func @_olivettiface_kernel(%arg0: memref<8x64xf32, #tpu.memory_space<vmem>>, %arg1: memref<64x128xf32, #tpu.memory_space<vmem>>, %arg2: memref<3x128xf32, #tpu.memory_space<vmem>>, %arg3: memref<128x128xf32, #tpu.memory_space<vmem>>, %arg4: memref<8x128xf32, #tpu.memory_space<vmem>>) attributes {dimension_semantics = [], scalar_prefetch = 0 : i64, scratch_operands = 0 : i64, tpu.core_type = #tpu.core_type<tc>} {
    %c0 = arith.constant 0 : index
    %c0_0 = arith.constant 0 : index
    %0 = vector.load %arg0[%c0, %c0_0] : memref<8x64xf32, #tpu.memory_space<vmem>>, vector<8x64xf32>
    %c0_1 = arith.constant 0 : index
    %c0_2 = arith.constant 0 : index
    %1 = vector.load %arg1[%c0_1, %c0_2] : memref<64x128xf32, #tpu.memory_space<vmem>>, vector<64x128xf32>
    %cst = arith.constant dense<0.000000e+00> : vector<8x128xf32>
    %2 = tpu.matmul %0, %1, %cst {dimension_numbers = #tpu.dot_dimension_numbers<[1], [0], [0], [1], [0, 0, 1, 1], [], []>} : vector<8x64xf32>, vector<64x128xf32>, vector<8x128xf32> -> vector<8x128xf32>
    %cst_3 = arith.constant dense<0.000000e+00> : vector<128xf32>
    %3 = vector.multi_reduction <add>, %2, %cst_3 [0] : vector<8x128xf32> to vector<128xf32>
    %4 = vector.shape_cast %3 : vector<128xf32> to vector<1x128xf32>
    %5 = arith.mulf %2, %2 : vector<8x128xf32>
    %cst_4 = arith.constant dense<0.000000e+00> : vector<128xf32>
    %6 = vector.multi_reduction <add>, %5, %cst_4 [0] : vector<8x128xf32> to vector<128xf32>
    %7 = vector.shape_cast %6 : vector<128xf32> to vector<1x128xf32>
    %cst_5 = arith.constant 1.250000e-01 : f32
    %8 = vector.broadcast %cst_5 : f32 to vector<1x128xf32>
    %9 = arith.mulf %4, %8 : vector<1x128xf32>
    %cst_6 = arith.constant 1.250000e-01 : f32
    %10 = vector.broadcast %cst_6 : f32 to vector<1x128xf32>
    %11 = arith.mulf %7, %10 : vector<1x128xf32>
    %12 = arith.mulf %9, %9 : vector<1x128xf32>
    %13 = arith.subf %11, %12 : vector<1x128xf32>
    %cst_7 = arith.constant 0.000000e+00 : f32
    %14 = vector.broadcast %cst_7 : f32 to vector<1x128xf32>
    %15 = arith.maximumf %13, %14 : vector<1x128xf32>
    %cst_8 = arith.constant 9.99999974E-6 : f32
    %16 = vector.broadcast %cst_8 : f32 to vector<1x128xf32>
    %17 = arith.addf %15, %16 : vector<1x128xf32>
    %18 = math.rsqrt %17 : vector<1x128xf32>
    %c0_9 = arith.constant 0 : index
    %c0_10 = arith.constant 0 : index
    %19 = vector.load %arg2[%c0_9, %c0_10] : memref<3x128xf32, #tpu.memory_space<vmem>>, vector<1x128xf32>
    %20 = arith.mulf %19, %18 : vector<1x128xf32>
    %c1 = arith.constant 1 : index
    %c0_11 = arith.constant 0 : index
    %21 = vector.load %arg2[%c1, %c0_11] : memref<3x128xf32, #tpu.memory_space<vmem>>, vector<1x128xf32>
    %22 = arith.mulf %9, %20 : vector<1x128xf32>
    %23 = arith.subf %21, %22 : vector<1x128xf32>
    %24 = vector.broadcast %20 : vector<1x128xf32> to vector<8x128xf32>
    %25 = arith.mulf %2, %24 : vector<8x128xf32>
    %26 = vector.broadcast %23 : vector<1x128xf32> to vector<8x128xf32>
    %27 = arith.addf %25, %26 : vector<8x128xf32>
    %cst_12 = arith.constant 0.000000e+00 : f32
    %28 = vector.broadcast %cst_12 : f32 to vector<8x128xf32>
    %29 = arith.maximumf %27, %28 : vector<8x128xf32>
    %c0_13 = arith.constant 0 : index
    %c0_14 = arith.constant 0 : index
    %30 = vector.load %arg3[%c0_13, %c0_14] : memref<128x128xf32, #tpu.memory_space<vmem>>, vector<128x128xf32>
    %cst_15 = arith.constant dense<0.000000e+00> : vector<8x128xf32>
    %31 = tpu.matmul %29, %30, %cst_15 {dimension_numbers = #tpu.dot_dimension_numbers<[1], [0], [0], [1], [0, 0, 1, 1], [], []>} : vector<8x128xf32>, vector<128x128xf32>, vector<8x128xf32> -> vector<8x128xf32>
    %c2 = arith.constant 2 : index
    %c0_16 = arith.constant 0 : index
    %32 = vector.load %arg2[%c2, %c0_16] : memref<3x128xf32, #tpu.memory_space<vmem>>, vector<1x128xf32>
    %33 = vector.broadcast %32 : vector<1x128xf32> to vector<8x128xf32>
    %34 = arith.addf %31, %33 : vector<8x128xf32>
    %c0_17 = arith.constant 0 : index
    %c0_18 = arith.constant 0 : index
    %35 = vector.load %arg4[%c0_17, %c0_18] : memref<8x128xf32, #tpu.memory_space<vmem>>, vector<8x128xf32>
    tpu.vector_store %arg4[%c0_17, %c0_18], %34 {strides = array<i32>} : memref<8x128xf32, #tpu.memory_space<vmem>>, vector<8x128xf32>,
    return
  }
}

</mosaic_0001>

<bundles_post_ra>
// kernel: tpu_custom_call.1
= control target key start
LH: loop header
LB: loop body
LE: loop exit
PB: predicated region body
PF: predicated region fallthrough
CT: control target
= control target key end

     0   :  { %9 = vsyncpa [#allocation3], 0  ;;  %s393_s0 = inlined_call_operand.hbm [shape: f32[8,64], index: 0, kind: input, shape index: {}]   ;;  %s394_s1 = inlined_call_operand.hbm [shape: f32[64,128], index: 1, kind: input, shape index: {}]   ;;  %s395_s2 = inlined_call_operand.hbm [shape: f32[3,128], index: 2, kind: input, shape index: {}]   ;;  %s396_s3 = inlined_call_operand.hbm [shape: f32[128,128], index: 3, kind: input, shape index: {}]   ;;  %s397_s4 = inlined_call_operand.hbm [shape: f32[8,128], index: 4, kind: output, shape index: {}]  }
   0x1   :  { %10 = vsyncpa [#allocation6], 0 }
   0x2   :  { %11 = vsyncpa [#allocation9], 0  ;;  %s28_s17 = sshll.u32 %s394_s1, 4  ;;  %s29_s17 = int_to_ptr.hbm [resolvable:$true] %s28_s17 }
   0x3   :  { %12 = vsyncpa [#allocation4], 0  ;;  %s346_s18 = smov [#allocation5]   ;;  %s18_s22 = sshll.u32 %s393_s0, 4  ;;  %s19_s22 = int_to_ptr.hbm [resolvable:$true] %s18_s22 }
   0x4   :  { %s30_s19 = sshll.u32 %s346_s18, 4  ;;  %s347_s23 = smov 128   ;;  %s31_s19 = int_to_ptr.vmem [resolvable:$true] %s30_s19 }
   0x5   :  { %s348_s24 = smov 8   ;;  %s349_s25 = smov [#allocation2]  }
   0x6   :  { %36 = dma.hbm_to_vmem [thread:$0]  %s29_s17, 1024, %s31_s19, [#allocation6], %s347_s23, %s347_s23, %s348_s24  }
   0x7   :  { %s20_s26 = sshll.u32 %s349_s25, 4  ;;  %s42_s29 = sshll.u32 %s395_s2, 4  ;;  %s21_s26 = int_to_ptr.vmem [resolvable:$true] %s20_s26  ;;  %s43_s29 = int_to_ptr.hbm [resolvable:$true] %s42_s29 }
   0x8   :  { %23 = dma.hbm_to_vmem [thread:$0]  %s19_s22, 128, %s21_s26, [#allocation3]  }
   0x9   :  { %s52_s5 = sshll.u32 %s396_s3, 4  ;;  %s350_s6 = smov [#allocation7]   ;;  %s53_s5 = int_to_ptr.hbm [resolvable:$true] %s52_s5 }
   0xa   :  { %s44_s7 = sshll.u32 %s350_s6, 4  ;;  %s351_s0 = smov [#allocation8]   ;;  %s45_s7 = int_to_ptr.vmem [resolvable:$true] %s44_s7 }
   0xb   :  { %47 = dma.hbm_to_vmem [thread:$0]  %s43_s29, 64, %s45_s7, [#allocation6]  }
   0xc   :  { %s54_s8 = sshll.u32 %s351_s0, 4  ;;  %s55_s8 = int_to_ptr.vmem [resolvable:$true] %s54_s8 }
   0xd   :  { %60 = dma.hbm_to_vmem [thread:$0]  %s53_s5, 2048, %s55_s8, [#allocation9], %s347_s23, %s347_s23, %s348_s24  }
   0xe   :  { %338 = dma.done.wait [#allocation3], 128  }
   0xf   :  { %339 = vsyncadd [#allocation3], 4294967168 }
  0x10   :  { %340 = dma.done.wait [#allocation6], 1088  }
  0x11   :  { %341 = vsyncadd [#allocation6], 4294966208 }
  0x12   :  { %342 = dma.done.wait [#allocation9], 2048  }
  0x13   :  { %343 = vsyncadd [#allocation9], 4294965248  ;;  %v85_v0 = vld [vmem:[#allocation5 + $0x38] sm:$0xff]  ;;  %v84_v1 = vld [vmem:[#allocation5 + $0x30] sm:$0xff]  ;;  %vm86_vm0 = vcmask 523264   ;;  %s352_s2 = smov [#allocation10]  }
  0x14   :  { %98 = vmatpush.msra.mxu0 %v85_v0  ;;  %v83_v2 = vld [vmem:[#allocation5 + $0x28] sm:$0xff]  ;;  %v82_v3 = vld [vmem:[#allocation5 + $0x20] sm:$0xff]  ;;  %v81_v4 = vld [vmem:[#allocation5 + $0x18] sm:$0xff]  ;;  %s193_s3 = sshll.u32 %s352_s2, 4  ;;  %s195_s11 = sshll.u32 %s397_s4, 4  ;;  %s194_s3 = int_to_ptr.vmem [resolvable:$true] %s193_s3  ;;  %s196_s11 = int_to_ptr.hbm [resolvable:$true] %s195_s11 }
  0x15   :  { %v80_v5 = vld [vmem:[#allocation5 + $0x10] sm:$0xff]  ;;  %v79_v6 = vld [vmem:[#allocation5 + $0x8] sm:$0xff]  ;;  %v78_v7 = vld [vmem:[#allocation5] sm:$0xff] }
  0x16   :  { %99 = vmatpush.msra.mxu0 %v84_v1  ;;  %v77_v8 = vld [vmem:[#allocation2] sm:$0xff]  ;;  %v162_v11 = vld [vmem:[#allocation8 + $0x68] sm:$0xff]  ;;  %v161_v12 = vld [vmem:[#allocation8 + $0x60] sm:$0xff] }
  0x17   :  { %v164_v9 = vld [vmem:[#allocation8 + $0x78] sm:$0xff]  ;;  %v163_v10 = vld [vmem:[#allocation8 + $0x70] sm:$0xff]  ;;  %v158_v18 = vld [vmem:[#allocation8 + $0x48] sm:$0xff] }
  0x18   :  { %100 = vmatpush.msra.mxu0 %v83_v2  ;;  %167 = vmatpush.msra.mxu1 %v164_v9  ;;  %v160_v13 = vld [vmem:[#allocation8 + $0x58] sm:$0xff]  ;;  %v159_v14 = vld [vmem:[#allocation8 + $0x50] sm:$0xff]  ;;  %v157_v21 = vld [vmem:[#allocation8 + $0x40] sm:$0xff] }
  0x19   :  { %v156_v24 = vld [vmem:[#allocation8 + $0x38] sm:$0xff]  ;;  %v155_v27 = vld [vmem:[#allocation8 + $0x30] sm:$0xff]  ;;  %v154_v30 = vld [vmem:[#allocation8 + $0x28] sm:$0xff] }
  0x1a   :  { %101 = vmatpush.msra.mxu0 %v82_v3  ;;  %168 = vmatpush.msra.mxu1 %v163_v10  ;;  %v153_v33 = vld [vmem:[#allocation8 + $0x20] sm:$0xff]  ;;  %v152_v36 = vld [vmem:[#allocation8 + $0x18] sm:$0xff]  ;;  %v151_v37 = vld [vmem:[#allocation8 + $0x10] sm:$0xff] }
  0x1b   :  { %v150_v40 = vld [vmem:[#allocation8 + $0x8] sm:$0xff]  ;;  %v149_v42 = vld [vmem:[#allocation8] sm:$0xff]  ;;  %v139_v51 = vld [vmem:[#allocation7] sm:$0x1] }
  0x1c   :  { %102 = vmatpush.msra.mxu0 %v81_v4  ;;  %169 = vmatpush.msra.mxu1 %v162_v11  ;;  %v141_v54 = vld [vmem:[#allocation7 + $0x1] sm:$0x1]  ;;  %v215_v62 = vld [vmem:[#allocation7 + $0x2] ss:$0 sm:$0xff] }
  0x1e   :  { %103 = vmatpush.msra.mxu0 %v80_v5  ;;  %170 = vmatpush.msra.mxu1 %v161_v12 }
  0x20   :  { %104 = vmatpush.msra.mxu0 %v79_v6  ;;  %171 = vmatpush.msra.mxu1 %v160_v13 }
  0x22   :  { %105 = vmatpush.msra.mxu0 %v78_v7  ;;  %172 = vmatpush.msra.mxu1 %v159_v14 }
  0x23   :  { %207 = vmatmul.msk.f32.vlgmr.msra.gmra.mxu0 %vm86_vm0, %v77_v8 }
  0x24   :  { %173 = vmatpush.msra.mxu1 %v158_v18 }
  0x26   :  { %174 = vmatpush.msra.mxu1 %v157_v21 }
  0x28   :  { %175 = vmatpush.msra.mxu1 %v156_v24 }
  0x2a   :  { %176 = vmatpush.msra.mxu1 %v155_v27 }
  0x2c   :  { %177 = vmatpush.msra.mxu1 %v154_v30 }
  0x2e   :  { %178 = vmatpush.msra.mxu1 %v153_v33 }
  0x30   :  { %179 = vmatpush.msra.mxu1 %v152_v36 }
  0x32   :  { %180 = vmatpush.msra.mxu1 %v151_v37 }
  0x34   :  { %181 = vmatpush.msra.mxu1 %v150_v40 }
  0x36   :  { %182 = vmatpush.msra.mxu1 %v149_v42 }
  0xa0   :  { %v107_v15 = vpop.f32.mrf.mxu0 }
  0xa1   :  { %v110_v16 = vrot.slane %v107_v15, 4  ;;  %v116_v17 = vmul.f32 %v107_v15, %v107_v15 }
  0xa3   :  { %v111_v19 = vadd.f32 %v110_v16, %v107_v15  ;;  %v117_v20 = vrot.slane %v116_v17, 4 }
  0xa5   :  { %v112_v22 = vrot.slane %v111_v19, 2  ;;  %v118_v23 = vadd.f32 %v117_v20, %v116_v17 }
  0xa7   :  { %v113_v25 = vadd.f32 %v112_v22, %v111_v19  ;;  %v119_v26 = vrot.slane %v118_v23, 2 }
  0xa9   :  { %v114_v28 = vrot.slane %v113_v25, 1  ;;  %v120_v29 = vadd.f32 %v119_v26, %v118_v23 }
  0xab   :  { %v115_v31 = vadd.f32 %v114_v28, %v113_v25  ;;  %v121_v32 = vrot.slane %v120_v29, 1 }
  0xad   :  { %v122_v34 = vadd.f32 %v121_v32, %v120_v29  ;;  %v123_v35 = vmul.f32 0.125, %v115_v31 }
  0xaf   :  { %v124_v38 = vmul.f32 0.125, %v122_v34  ;;  %v125_v39 = vmul.f32 %v123_v35, %v123_v35 }
  0xb1   :  { %v126_v41 = vsub.f32 %v124_v38, %v125_v39 }
  0xb3   :  { %v127_v43 = vmax.f32 %v126_v41, 0.0 }
  0xb5   :  { %v128_v44 = vadd.f32 1e-05, %v127_v43 }
  0xb7   :  { %216 = vrsqrt.f32 %v128_v44  ;;  %vm135_vm2 = vweird.f32 %v128_v44 }
  0xbd   :  { %v217_v45 = vpop.eup %216 }
  0xbe   :  { %v130_v46 = vmul.f32 %v217_v45, %v128_v44  ;;  %vm136_vm1 = vweird.f32 %v217_v45 }
  0xbf   :  { %vm137_vm3 = vmor %vm135_vm2, %vm136_vm1 }
  0xc0   :  { %v131_v47 = vmul.f32 %v217_v45, %v130_v46 }
  0xc2   :  { %v132_v48 = vmul.f32 0.5, %v131_v47 }
  0xc4   :  { %v133_v49 = vsub.f32 1.5, %v132_v48 }
  0xc6   :  { %v134_v50 = vmul.f32 %v217_v45, %v133_v49 }
  0xc8   :  { %v138_v52 = vsel %vm137_vm3, %v217_v45, %v134_v50 }
  0xc9   :  { %v140_v53 = vmul.f32 %v139_v51, %v138_v52 }
  0xcb   :  { %v144_v55 = vperm.slane %v140_v53, 0  ;;  %v142_v56 = vmul.f32 %v140_v53, %v123_v35 }
  0xcd   :  { %v143_v57 = vsub.f32 %v141_v54, %v142_v56  ;;  %v145_v58 = vmul.f32 %v144_v55, %v107_v15 }
  0xcf   :  { %v146_v59 = vperm.slane %v143_v57, 0 }
  0xd1   :  { %v147_v60 = vadd.f32 %v146_v59, %v145_v58 }
  0xd3   :  { %v148_v61 = vmax.f32 %v147_v60, 0.0 }
  0xd5   :  { %183 = vmatmul.f32.vlgmr.msra.gmra.mxu1 %v148_v61 }
 0x152   :  { %v184_v63 = vpop.f32.mrf.mxu1 }
 0x153   :  { %v185_v0 = vadd.f32 %v215_v62, %v184_v63 }
 0x155   :  { %187 = vst [vmem:[#allocation10] sm:$0xff] %v185_v0 }
 0x156   :  { %198 = dma.vmem_to_hbm [thread:$0]  %s194_s3, 128, %s196_s11, [#allocation4]  }
 0x157   :  { %344 = dma.done.wait [#allocation4], 128  }
 0x158   :  { %345 = vsyncadd [#allocation4], 4294967168 }
 0x159   :  { %203 = vsyncpa [#allocation3], 1 }
 0x15a   :  { %204 = vsyncpa [#allocation6], 1 }
 0x15b   :  { %205 = vsyncpa [#allocation9], 1 }
 0x15c   :  { %206 = vsyncpa [#allocation4], 1 }

</bundles_post_ra>
